<compile_context>
chip_gen: v7x
topology: tpu7x:2x2x1
jax: 0.10.0
libtpu: 0.0.40
codegen_flags: <defaults>
</compile_context>

<pallas_src>
import functools

import jax
import jax.numpy as jnp
from jax.experimental import pallas as pl
from jax.experimental.pallas import tpu as pltpu

D_IN = 784
D_HID = 256
D_OUT = 10


def _round_up(v, m):
    return ((v + m - 1) // m) * m


def mlp_kernel(x_ref, w1_ref, b1_ref, w2_ref, b2_ref, o_ref):
    # x_ref:  (TB, 784) f32      w1_ref: (784, 256) bf16   b1_ref: (1, 256) f32
    # w2_ref: (256, 10) bf16     b2_ref: (1, 10)   f32     o_ref:  (TB, 10) f32
    # In-kernel bf16 cast of x (saves a standalone HBM cast pass in the wrapper).
    x = x_ref[...].astype(jnp.bfloat16)
    # Layer 1: bf16 matmul on the MXU, f32 accumulation; bias + ReLU on the VPU.
    h = jnp.dot(x, w1_ref[...], preferred_element_type=jnp.float32)
    h = jnp.maximum(h + b1_ref[...], 0.0)
    # Layer 2: activations back to bf16 for the MXU, accumulate in f32.
    y = jnp.dot(h.astype(jnp.bfloat16), w2_ref[...],
                preferred_element_type=jnp.float32)
    o_ref[...] = (y + b2_ref[...]).astype(o_ref.dtype)


def prepare_params(w1, b1, w2, b2):
    """One-time weight prep (hoisted out of the jitted forward):
    bf16 matmul weights, f32 row-vector biases."""
    w1_bf = jnp.asarray(w1, jnp.bfloat16).reshape(D_IN, D_HID)
    w2_bf = jnp.asarray(w2, jnp.bfloat16).reshape(D_HID, D_OUT)
    b1_f = jnp.asarray(b1, jnp.float32).reshape(1, D_HID)
    b2_f = jnp.asarray(b2, jnp.float32).reshape(1, D_OUT)
    return w1_bf, b1_f, w2_bf, b2_f


@functools.partial(jax.jit, static_argnames=("tb_max",))
def mlp_forward(x, w1_bf, b1_f, w2_bf, b2_f, *, tb_max=1024):
    """x: any shape with trailing dims multiplying to 784 (e.g. NCHW MNIST).
    Returns (batch, 10) f32 logits, matching the PyTorch MLP.forward."""
    x2d = x.reshape(-1, D_IN).astype(jnp.float32)     # x.view(-1, 784)
    B = x2d.shape[0]

    # Batch tile: aim for >= 4 grid steps (v7x: 2 TCs share the "parallel"
    # axis; all chips: keeps double-buffering active), floor 256 rows to
    # amortize the ~0.35 us/step overhead, never much larger than the batch,
    # multiple of 16.  tb_max=1024 respects v5e's 16 MiB default scoped VMEM
    # with the f32 x tiles.
    tb = min(tb_max, max(256, _round_up((B + 3) // 4, 16)))
    tb = min(tb, _round_up(B, 16))
    grid = ((B + tb - 1) // tb,)   # partial last block masked by Pallas; no jnp.pad

    cost = pl.CostEstimate(
        flops=2 * B * D_IN * D_HID + 2 * B * D_HID * D_OUT,
        transcendentals=0,
        bytes_accessed=(B * D_IN * 4                # x (f32)
                        + D_IN * D_HID * 2          # w1 (bf16)
                        + D_HID * D_OUT * 2         # w2 (bf16)
                        + D_HID * 4 + D_OUT * 4     # biases (f32)
                        + B * D_OUT * 4))           # out (f32, width 10)

    out = pl.pallas_call(
        mlp_kernel,
        out_shape=jax.ShapeDtypeStruct((B, D_OUT), jnp.float32),
        grid_spec=pltpu.PrefetchScalarGridSpec(
            num_scalar_prefetch=0,
            grid=grid,
            in_specs=[
                pl.BlockSpec((tb, D_IN), lambda i: (i, 0)),      # x tile (streamed)
                pl.BlockSpec((D_IN, D_HID), lambda i: (0, 0)),   # w1 resident
                pl.BlockSpec((1, D_HID), lambda i: (0, 0)),      # b1 resident
                pl.BlockSpec((D_HID, D_OUT), lambda i: (0, 0)),  # w2 resident
                pl.BlockSpec((1, D_OUT), lambda i: (0, 0)),      # b2 resident
            ],
            out_specs=pl.BlockSpec((tb, D_OUT), lambda i: (i, 0)),
        ),
        compiler_params=pltpu.CompilerParams(
            # Independent batch tiles -> shard across TensorCores on v7x.
            dimension_semantics=("parallel",)),
        cost_estimate=cost,
    )(x2d, w1_bf, b1_f, w2_bf, b2_f)

    return out


def init_params(key):
    """Deterministic init matching nn.Linear's U(-1/sqrt(fan_in), 1/sqrt(fan_in)).
    Weights stored as (in_features, out_features) so the kernel computes
    y = x @ W + b (== PyTorch's x @ W.T with W of shape (out, in))."""
    k1, k2, k3, k4 = jax.random.split(key, 4)
    bound1 = 1.0 / jnp.sqrt(float(D_IN))
    bound2 = 1.0 / jnp.sqrt(float(D_HID))
    w1 = jax.random.uniform(k1, (D_IN, D_HID), jnp.float32, -bound1, bound1)
    b1 = jax.random.uniform(k2, (1, D_HID), jnp.float32, -bound1, bound1)
    w2 = jax.random.uniform(k3, (D_HID, D_OUT), jnp.float32, -bound2, bound2)
    b2 = jax.random.uniform(k4, (1, D_OUT), jnp.float32, -bound2, bound2)
    return w1, b1, w2, b2


if __name__ == "__main__":
    key = jax.random.PRNGKey(0)
    kx, kp = jax.random.split(key)
    # MNIST-like NCHW input: batch=2, 1 channel, 28x28 -> flattened to 784.
    x = jax.random.normal(kx, (2, 1, 28, 28), jnp.float32)
    w1, b1, w2, b2 = init_params(kp)
    params = prepare_params(w1, b1, w2, b2)     # one-time bf16 weight prep

    out = mlp_forward(x, *params)
    out = jax.block_until_ready(out)
    assert out.shape == (2, 10)

    # Pure-JAX f32 reference (kernel uses bf16 matmul operands -> loose tolerance).
    x2d = x.reshape(-1, D_IN)
    ref_f32 = jnp.maximum(x2d @ w1 + b1, 0.0) @ w2 + b2
    assert jnp.allclose(out, ref_f32, atol=3e-2, rtol=3e-2), (
        jnp.max(jnp.abs(out - ref_f32)))

    # bf16-matched reference (same arithmetic as the kernel) for a tight check.
    h_bf = jnp.maximum(
        jnp.dot(x2d.astype(jnp.bfloat16), w1.astype(jnp.bfloat16),
                preferred_element_type=jnp.float32) + b1, 0.0)
    ref_bf = jnp.dot(h_bf.astype(jnp.bfloat16), w2.astype(jnp.bfloat16),
                     preferred_element_type=jnp.float32) + b2
    assert jnp.allclose(out, ref_bf, atol=1e-3, rtol=1e-3), (
        jnp.max(jnp.abs(out - ref_bf)))

    print("KERNEL_OK")
</pallas_src>

<mosaic_0001>
module attributes {stable_mosaic.version = 11 : i64} {
  func.func @mlp_kernel(%arg0: i32, %arg1: memref<16x784xf32, #tpu.memory_space<vmem>>, %arg2: memref<784x256xbf16, #tpu.memory_space<vmem>>, %arg3: memref<1x256xf32, #tpu.memory_space<vmem>>, %arg4: memref<256x10xbf16, #tpu.memory_space<vmem>>, %arg5: memref<1x10xf32, #tpu.memory_space<vmem>>, %arg6: memref<16x10xf32, #tpu.memory_space<vmem>>) attributes {dimension_semantics = [#tpu.dimension_semantics<parallel>], iteration_bounds = array<i64: 1>, scalar_prefetch = 0 : i64, scratch_operands = 0 : i64, tpu.core_type = #tpu.core_type<tc>, window_params = [{transform_indices = @transform_0, window_bounds = array<i64: 16, 784>}, {pipeline_mode = #tpu.pipeline_mode<synchronous>, transform_indices = @transform_1, window_bounds = array<i64: 784, 256>}, {pipeline_mode = #tpu.pipeline_mode<synchronous>, transform_indices = @transform_2, window_bounds = array<i64: 1, 256>}, {pipeline_mode = #tpu.pipeline_mode<synchronous>, transform_indices = @transform_3, window_bounds = array<i64: 256, 10>}, {pipeline_mode = #tpu.pipeline_mode<synchronous>, transform_indices = @transform_4, window_bounds = array<i64: 1, 10>}, {transform_indices = @transform_5, window_bounds = array<i64: 16, 10>}]} {
    %c0 = arith.constant 0 : index
    %c0_0 = arith.constant 0 : index
    %0 = vector.load %arg1[%c0, %c0_0] : memref<16x784xf32, #tpu.memory_space<vmem>>, vector<16x784xf32>
    %1 = arith.truncf %0 : vector<16x784xf32> to vector<16x784xbf16>
    %c0_1 = arith.constant 0 : index
    %c0_2 = arith.constant 0 : index
    %2 = vector.load %arg2[%c0_1, %c0_2] : memref<784x256xbf16, #tpu.memory_space<vmem>>, vector<784x256xbf16>
    %cst = arith.constant dense<0.000000e+00> : vector<16x256xf32>
    %3 = tpu.matmul %1, %2, %cst {dimension_numbers = #tpu.dot_dimension_numbers<[1], [0], [0], [1], [0, 0, 1, 1], [], []>} : vector<16x784xbf16>, vector<784x256xbf16>, vector<16x256xf32> -> vector<16x256xf32>
    %c0_3 = arith.constant 0 : index
    %c0_4 = arith.constant 0 : index
    %4 = vector.load %arg3[%c0_3, %c0_4] : memref<1x256xf32, #tpu.memory_space<vmem>>, vector<1x256xf32>
    %5 = vector.broadcast %4 : vector<1x256xf32> to vector<16x256xf32>
    %6 = arith.addf %3, %5 : vector<16x256xf32>
    %cst_5 = arith.constant 0.000000e+00 : f32
    %7 = vector.broadcast %cst_5 : f32 to vector<16x256xf32>
    %8 = arith.maximumf %6, %7 : vector<16x256xf32>
    %9 = arith.truncf %8 : vector<16x256xf32> to vector<16x256xbf16>
    %c0_6 = arith.constant 0 : index
    %c0_7 = arith.constant 0 : index
    %10 = vector.load %arg4[%c0_6, %c0_7] : memref<256x10xbf16, #tpu.memory_space<vmem>>, vector<256x10xbf16>
    %cst_8 = arith.constant dense<0.000000e+00> : vector<16x10xf32>
    %11 = tpu.matmul %9, %10, %cst_8 {dimension_numbers = #tpu.dot_dimension_numbers<[1], [0], [0], [1], [0, 0, 1, 1], [], []>} : vector<16x256xbf16>, vector<256x10xbf16>, vector<16x10xf32> -> vector<16x10xf32>
    %c0_9 = arith.constant 0 : index
    %c0_10 = arith.constant 0 : index
    %12 = vector.load %arg5[%c0_9, %c0_10] : memref<1x10xf32, #tpu.memory_space<vmem>>, vector<1x10xf32>
    %13 = vector.broadcast %12 : vector<1x10xf32> to vector<16x10xf32>
    %14 = arith.addf %11, %13 : vector<16x10xf32>
    %c0_11 = arith.constant 0 : index
    %c0_12 = arith.constant 0 : index
    %15 = vector.load %arg6[%c0_11, %c0_12] : memref<16x10xf32, #tpu.memory_space<vmem>>, vector<16x10xf32>
    tpu.vector_store %arg6[%c0_11, %c0_12], %14 {strides = array<i32>} : memref<16x10xf32, #tpu.memory_space<vmem>>, vector<16x10xf32>,
    return
  }
  func.func @transform_0(%arg0: i32) -> (i32, i32) {
    %c0_i32 = arith.constant 0 : i32
    %c0_i32_0 = arith.constant 0 : i32
    return %arg0, %c0_i32 : i32, i32
  }
  func.func @transform_1(%arg0: i32) -> (i32, i32) {
    %c0_i32 = arith.constant 0 : i32
    %c0_i32_0 = arith.constant 0 : i32
    %c0_i32_1 = arith.constant 0 : i32
    return %c0_i32, %c0_i32_0 : i32, i32
  }
  func.func @transform_2(%arg0: i32) -> (i32, i32) {
    %c0_i32 = arith.constant 0 : i32
    %c0_i32_0 = arith.constant 0 : i32
    %c0_i32_1 = arith.constant 0 : i32
    return %c0_i32, %c0_i32_0 : i32, i32
  }
  func.func @transform_3(%arg0: i32) -> (i32, i32) {
    %c0_i32 = arith.constant 0 : i32
    %c0_i32_0 = arith.constant 0 : i32
    %c0_i32_1 = arith.constant 0 : i32
    return %c0_i32, %c0_i32_0 : i32, i32
  }
  func.func @transform_4(%arg0: i32) -> (i32, i32) {
    %c0_i32 = arith.constant 0 : i32
    %c0_i32_0 = arith.constant 0 : i32
    %c0_i32_1 = arith.constant 0 : i32
    return %c0_i32, %c0_i32_0 : i32, i32
  }
  func.func @transform_5(%arg0: i32) -> (i32, i32) {
    %c0_i32 = arith.constant 0 : i32
    %c0_i32_0 = arith.constant 0 : i32
    return %arg0, %c0_i32 : i32, i32
  }
}

</mosaic_0001>

<bundles_post_ra>
// kernel: mlp_forward.1
= control target key start
LH: loop header
LB: loop body
LE: loop exit
PB: predicated region body
PF: predicated region fallthrough
CT: control target
= control target key end

     0   :  { %10 = vsyncpa [#allocation3], 0  ;;  %s1825_s0 = inlined_call_operand.vmem [shape: f32[2,784], index: 0, kind: input, shape index: {}]   ;;  %s1826_s1 = inlined_call_operand.hbm [shape: bf16[784,256], index: 1, kind: input, shape index: {}]   ;;  %s1827_s2 = inlined_call_operand.vmem [shape: f32[1,256], index: 2, kind: input, shape index: {}]   ;;  %s1828_s3 = inlined_call_operand.vmem [shape: bf16[256,10], index: 3, kind: input, shape index: {}]   ;;  %s1829_s4 = inlined_call_operand.vmem [shape: f32[1,10], index: 4, kind: input, shape index: {}]   ;;  %s1830_s5 = inlined_call_operand.hbm [shape: f32[2,10], index: 5, kind: output, shape index: {}]  }
   0x1   :  { %11 = vsyncpa [#allocation4], 0  ;;  %s1606_s18 = smov [#allocation2]   ;;  %s1558_s22 = scalar_lea.hbm %s1826_s1, 12544 }
   0x2   :  { %s19_s19 = sshll.u32 %s1606_s18, 4  ;;  %p1559_p0 = scmp.ne.s32.totalorder %s1826_s1, %s1558_s22  ;;  %s20_s19 = int_to_ptr.vmem [resolvable:$true] %s19_s19 }
   0x3   :  { %p1562_p1 = scmp.lt.u32.totalorder %s1558_s22, %s1826_s1 }
   0x5   :  { %p1564_p2 = pnand %p1562_p1, %p1559_p0 }
   0x7   :  { %1567 = shalt.err (!%p1564_p2)
}
   0x8   :  { %s1568_s27 = scalar_lea.vmem %s20_s19, 12544  ;;  %p1573_p4 = scmp.lt.s32.totalorder %s20_s19, %s20_s19 }
   0x9   :  { %p1569_p3 = scmp.ne.s32.totalorder %s20_s19, %s1568_s27  ;;  %p1574_p5 = scmp.lt.s32.totalorder %s1568_s27, %s1568_s27 }
   0xb   :  { %p1575_p6 = por %p1574_p5, %p1573_p4 }
   0xd   :  { %p1576_p7 = pnand %p1575_p6, %p1569_p3 }
   0xf   :  { %1579 = shalt.err (!%p1576_p7)
}
  0x10   :  { %s1607_s28 = smov 128   ;;  %s1608_s29 = smov 8  }
  0x11   :  { %25 = dma.hbm_to_vmem [thread:$0]  %s1826_s1, 12544, %s20_s19, [#allocation3], %s1607_s28, %s1607_s28, %s1608_s29  }
  0x12   :  { %1602 = dma.done.wait [#allocation3], 12544  }
  0x13   :  { %1603 = vsyncadd [#allocation3], 4294954752  ;;  %v1371_v0 = vld [vmem:[#allocation2 + $0x104] ss:$8 sps:$4 sm:$0xff]   ;;  %v1373_v1 = vld [vmem:[#allocation2 + $0x100] ss:$8 sps:$4 sm:$0xff]   ;;  %v75_v14 = vlaneseq }
  0x14   :  { %878 = vmatprep.subr.bf16.mxu0 %v1371_v0  ;;  %v1374_v2 = vld [vmem:[#allocation2 + $0x114] ss:$8 sps:$4 sm:$0xff]   ;;  %v1376_v3 = vld [vmem:[#allocation2 + $0x110] ss:$8 sps:$4 sm:$0xff]   ;;  %v1377_v4 = vld [vmem:[#allocation2 + $0x124] ss:$8 sps:$4 sm:$0xff]  }
  0x15   :  { %879 = vmatpush1.bf16.msra.mxu0 %v1373_v1  ;;  %v1379_v5 = vld [vmem:[#allocation2 + $0x120] ss:$8 sps:$4 sm:$0xff]   ;;  %v1380_v6 = vld [vmem:[#allocation2 + $0x134] ss:$8 sps:$4 sm:$0xff]   ;;  %v1382_v7 = vld [vmem:[#allocation2 + $0x130] ss:$8 sps:$4 sm:$0xff]  }
  0x16   :  { %880 = vmatprep.subr.bf16.mxu0 %v1374_v2  ;;  %v1383_v8 = vld [vmem:[#allocation2 + $0x144] ss:$8 sps:$4 sm:$0xff]   ;;  %v1385_v9 = vld [vmem:[#allocation2 + $0x140] ss:$8 sps:$4 sm:$0xff]   ;;  %v1386_v10 = vld [vmem:[#allocation2 + $0x154] ss:$8 sps:$4 sm:$0xff]  }
  0x17   :  { %v1388_v11 = vld [vmem:[#allocation2 + $0x150] ss:$8 sps:$4 sm:$0xff]   ;;  %v1609_v12 = vmov 1983009808   ;;  %v1413_v15 = vld [vmem:[#allocation2 + $0x4] ss:$8 sps:$4 sm:$0xff]  }
  0x18   :  { %v73_v13 = vunpack.c.l.s4 %v1609_v12  ;;  %v1415_v16 = vld [vmem:[#allocation2] ss:$8 sps:$4 sm:$0xff]   ;;  %v1389_v17 = vld [vmem:[#allocation2 + $0x164] ss:$8 sps:$4 sm:$0xff]   ;;  %835 = vmatprep.subr.bf16.mxu1 %v1413_v15  ;;  %v1419_v18 = vld [vmem:[#allocation2 + $0x14] ss:$8 sps:$4 sm:$0xff]  }
  0x19   :  { %881 = vmatpush1.bf16.msra.mxu0 %v1376_v3  ;;  %836 = vmatpush1.bf16.msra.mxu1 %v1415_v16  ;;  %v1421_v19 = vld [vmem:[#allocation2 + $0x10] ss:$8 sps:$4 sm:$0xff]   ;;  %v1656_v21 = vshrl.u32 %v75_v14, 7  ;;  %v1391_v22 = vld [vmem:[#allocation2 + $0x160] ss:$8 sps:$4 sm:$0xff]   ;;  %vm831_vm0 = vcmask 130048  }
  0x1a   :  { %882 = vmatprep.subr.bf16.mxu0 %v1377_v4  ;;  %v74_v20 = vunpack.c.0.s8 %v73_v13  ;;  %v1392_v23 = vld [vmem:[#allocation2 + $0x174] ss:$8 sps:$4 sm:$0xff]   ;;  %837 = vmatprep.subr.bf16.mxu1 %v1419_v18  ;;  %v1425_v24 = vld [vmem:[#allocation2 + $0x24] ss:$8 sps:$4 sm:$0xff]   ;;  %v1394_v25 = vld [vmem:[#allocation2 + $0x170] ss:$8 sps:$4 sm:$0xff]  }
  0x1b   :  { %v1427_v26 = vld [vmem:[#allocation2 + $0x20] ss:$8 sps:$4 sm:$0xff]   ;;  %v1395_v27 = vld [vmem:[#allocation2 + $0x184] ss:$8 sps:$4 sm:$0xff]   ;;  %v1439_v38 = vld [vmem:[#allocation2 + $0x34] ss:$8 sps:$4 sm:$0xff]  }
  0x1c   :  { %v1659_v28 = vsub.s32 %v74_v20, %v1656_v21  ;;  %v1428_v29 = vld [vmem:[%s1825_s0 + $0x4] ss:$14 sps:$4 sm:$0xff]   ;;  %v1430_v30 = vld [vmem:[%s1825_s0 + $0x20] ss:$14 sps:$4 sm:$0xff]   ;;  %v1432_v31 = vld [vmem:[%s1825_s0 + $0x3c] ss:$14 sps:$4 sm:$0xff]  }
  0x1d   :  { %883 = vmatpush1.bf16.msra.mxu0 %v1379_v5  ;;  %838 = vmatpush1.bf16.msra.mxu1 %v1421_v19  ;;  %v1434_v32 = vld [vmem:[%s1825_s0 + $0x58] ss:$14 sps:$4 sm:$0xff]   ;;  %v1445_v43 = vld [vmem:[#allocation2 + $0x44] ss:$8 sps:$4 sm:$0xff]   ;;  %vm1189_vm1 = vcmask 80896  }
  0x1e   :  { %884 = vmatprep.subr.bf16.mxu0 %v1380_v6  ;;  %839 = vmatprep.subr.bf16.mxu1 %v1425_v24  ;;  %v1397_v33 = vld [vmem:[#allocation2 + $0x180] ss:$8 sps:$4 sm:$0xff]   ;;  %v1674_v34 = vrot.slane %v1428_v29, %v1659_v28  ;;  %v1677_v35 = vrot.slane %v1430_v30, %v1659_v28  ;;  %v1680_v36 = vrot.slane %v1432_v31, %v1659_v28  ;;  %v1441_v39 = vld [vmem:[#allocation2 + $0x30] ss:$8 sps:$4 sm:$0xff]   ;;  %v1398_v40 = vld [vmem:[#allocation2 + $0x194] ss:$8 sps:$4 sm:$0xff]  }
  0x1f   :  { %v1683_v37 = vrot.slane %v1434_v32, %v1659_v28  ;;  %v1447_v44 = vld [vmem:[#allocation2 + $0x40] ss:$8 sps:$4 sm:$0xff]   ;;  %v1400_v45 = vld [vmem:[#allocation2 + $0x190] ss:$8 sps:$4 sm:$0xff]   ;;  %v1401_v46 = vld [vmem:[#allocation2 + $0x1a4] ss:$8 sps:$4 sm:$0xff]  }
  0x20   :  { %v103_v41 = vcombine.high %v1674_v34, %v1677_v35  ;;  %v1451_v48 = vld [vmem:[#allocation2 + $0x54] ss:$8 sps:$4 sm:$0xff]   ;;  %v1453_v49 = vld [vmem:[#allocation2 + $0x50] ss:$8 sps:$4 sm:$0xff]   ;;  %v1403_v50 = vld [vmem:[#allocation2 + $0x1a0] ss:$8 sps:$4 sm:$0xff]   ;;  %v102_v5 = vcombine.low %v1674_v34, %v1677_v35 }
  0x21   :  { %885 = vmatpush1.bf16.msra.mxu0 %v1382_v7  ;;  %840 = vmatpush1.bf16.msra.mxu1 %v1427_v26  ;;  %v174_v42 = vcombine.high %v1680_v36, %v1683_v37  ;;  %v1457_v51 = vld [vmem:[#allocation2 + $0x64] ss:$8 sps:$4 sm:$0xff]   ;;  %v1404_v52 = vld [vmem:[#allocation2 + $0x1b4] ss:$8 sps:$4 sm:$0xff]   ;;  %v1459_v53 = vld [vmem:[#allocation2 + $0x60] ss:$8 sps:$4 sm:$0xff]   ;;  %v173_v6 = vcombine.low %v1680_v36, %v1683_v37 }
  0x22   :  { %886 = vmatprep.subr.bf16.mxu0 %v1383_v8  ;;  %841 = vmatprep.subr.bf16.mxu1 %v1439_v38  ;;  %v1406_v54 = vld [vmem:[#allocation2 + $0x1b0] ss:$8 sps:$4 sm:$0xff]   ;;  %v1463_v55 = vld [vmem:[#allocation2 + $0x74] ss:$8 sps:$4 sm:$0xff]   ;;  %v1407_v56 = vld [vmem:[#allocation2 + $0x1c4] ss:$8 sps:$4 sm:$0xff]  }
  0x23   :  { %v227_v47 = vpack.c.bf16 %v174_v42, %v103_v41  ;;  %v1465_v57 = vld [vmem:[#allocation2 + $0x70] ss:$8 sps:$4 sm:$0xff]   ;;  %v1409_v58 = vld [vmem:[#allocation2 + $0x1c0] ss:$8 sps:$4 sm:$0xff]   ;;  %v1469_v59 = vld [vmem:[#allocation2 + $0x84] ss:$8 sps:$4 sm:$0xff]  }
  0x24   :  { %v1410_v60 = vld [vmem:[#allocation2 + $0x1d4] ss:$8 sps:$4 sm:$0xff]   ;;  %v1471_v61 = vld [vmem:[#allocation2 + $0x80] ss:$8 sps:$4 sm:$0xff]   ;;  %v1412_v62 = vld [vmem:[#allocation2 + $0x1d0] ss:$8 sps:$4 sm:$0xff]  }
  0x25   :  { %887 = vmatpush1.bf16.msra.mxu0 %v1385_v9  ;;  %842 = vmatpush1.bf16.msra.mxu1 %v1441_v39  ;;  %v1475_v63 = vld [vmem:[#allocation2 + $0x94] ss:$8 sps:$4 sm:$0xff]   ;;  %v1416_v0 = vld [vmem:[#allocation2 + $0x1e4] ss:$8 sps:$4 sm:$0xff]   ;;  %v1477_v1 = vld [vmem:[#allocation2 + $0x90] ss:$8 sps:$4 sm:$0xff]  }
  0x26   :  { %888 = vmatprep.subr.bf16.mxu0 %v1386_v10  ;;  %843 = vmatprep.subr.bf16.mxu1 %v1445_v43  ;;  %v1418_v2 = vld [vmem:[#allocation2 + $0x1e0] ss:$8 sps:$4 sm:$0xff]   ;;  %v1481_v3 = vld [vmem:[#allocation2 + $0xa4] ss:$8 sps:$4 sm:$0xff]   ;;  %v1422_v4 = vld [vmem:[#allocation2 + $0x1f4] ss:$8 sps:$4 sm:$0xff]  }
  0x27   :  { %910 = vmatprep.mubr.bf16.mxu0 %v227_v47  ;;  %v1483_v7 = vld [vmem:[#allocation2 + $0xa0] ss:$8 sps:$4 sm:$0xff]   ;;  %v1424_v8 = vld [vmem:[#allocation2 + $0x1f0] ss:$8 sps:$4 sm:$0xff]   ;;  %v1487_v9 = vld [vmem:[#allocation2 + $0xb4] ss:$8 sps:$4 sm:$0xff]  }
  0x28   :  { %v1438_v10 = vld [vmem:[#allocation2 + $0x204] ss:$8 sps:$4 sm:$0xff]   ;;  %v1489_v12 = vld [vmem:[#allocation2 + $0xb0] ss:$8 sps:$4 sm:$0xff]   ;;  %v1436_v13 = vld [vmem:[#allocation2 + $0x200] ss:$8 sps:$4 sm:$0xff]  }
  0x29   :  { %889 = vmatpush1.bf16.msra.mxu0 %v1388_v11  ;;  %844 = vmatpush1.bf16.msra.mxu1 %v1447_v44  ;;  %v226_v11 = vpack.c.bf16 %v173_v6, %v102_v5  ;;  %v1493_v14 = vld [vmem:[#allocation2 + $0xc4] ss:$8 sps:$4 sm:$0xff]   ;;  %v1444_v15 = vld [vmem:[#allocation2 + $0x214] ss:$8 sps:$4 sm:$0xff]   ;;  %v1495_v16 = vld [vmem:[#allocation2 + $0xc0] ss:$8 sps:$4 sm:$0xff]  }
  0x2a   :  { %890 = vmatprep.subr.bf16.mxu0 %v1389_v17  ;;  %845 = vmatprep.subr.bf16.mxu1 %v1451_v48  ;;  %v1517_v17 = vld [vmem:[%s1825_s0] ss:$14 sps:$4 sm:$0xff]   ;;  %v1518_v18 = vld [vmem:[%s1825_s0 + $0x1c] ss:$14 sps:$4 sm:$0xff]   ;;  %v1519_v19 = vld [vmem:[%s1825_s0 + $0x38] ss:$14 sps:$4 sm:$0xff]  }
  0x2b   :  { %v1520_v20 = vld [vmem:[%s1825_s0 + $0x54] ss:$14 sps:$4 sm:$0xff]   ;;  %v78_v24 = vrot.slane %v1517_v17, %v1659_v28  ;;  %v1448_v30 = vld [vmem:[#allocation2 + $0x220] ss:$8 sps:$4 sm:$0xff]  }
  0x2c   :  { %v1450_v26 = vld [vmem:[#allocation2 + $0x224] ss:$8 sps:$4 sm:$0xff]   ;;  %v163_v29 = vrot.slane %v1520_v20, %v1659_v28  ;;  %v1456_v32 = vld [vmem:[#allocation2 + $0x234] ss:$8 sps:$4 sm:$0xff]   ;;  %v1454_v37 = vld [vmem:[#allocation2 + $0x230] ss:$8 sps:$4 sm:$0xff]  }
  0x2d   :  { %891 = vmatpush1.bf16.msra.mxu0 %v1391_v22  ;;  %846 = vmatpush1.bf16.msra.mxu1 %v1453_v49  ;;  %v1442_v22 = vld [vmem:[#allocation2 + $0x210] ss:$8 sps:$4 sm:$0xff]   ;;  %v1505_v34 = vld [vmem:[#allocation2 + $0xe4] ss:$8 sps:$4 sm:$0xff]   ;;  %v1507_v41 = vld [vmem:[#allocation2 + $0xe0] ss:$8 sps:$4 sm:$0xff]  }
  0x2e   :  { %892 = vmatprep.subr.bf16.mxu0 %v1392_v23  ;;  %847 = vmatprep.subr.bf16.mxu1 %v1457_v51  ;;  %v1499_v23 = vld [vmem:[#allocation2 + $0xd4] ss:$8 sps:$4 sm:$0xff]   ;;  %v1530_v38 = vld [vmem:[%s1825_s0 + $0x8] ss:$14 sps:$4 sm:$0xff]  }
  0x2f   :  { %v1533_v39 = vld [vmem:[%s1825_s0 + $0x24] ss:$14 sps:$4 sm:$0xff]   ;;  %v1532_v43 = vld [vmem:[%s1825_s0 + $0xc] ss:$14 sps:$4 sm:$0x33]  }
  0x30   :  { %v1511_v42 = vld [vmem:[#allocation2 + $0xf4] ss:$8 sps:$4 sm:$0xff]   ;;  %v1535_v44 = vld [vmem:[%s1825_s0 + $0x28] ss:$14 sps:$4 sm:$0x33]  }
  0x31   :  { %893 = vmatpush1.bf16.msra.mxu0 %v1394_v25  ;;  %848 = vmatpush1.bf16.msra.mxu1 %v1459_v53  ;;  %v92_v25 = vrot.slane %v1518_v18, %v1659_v28  ;;  %v1536_v47 = vld [vmem:[%s1825_s0 + $0x40] ss:$14 sps:$4 sm:$0xff]   ;;  %v1538_v48 = vld [vmem:[%s1825_s0 + $0x44] ss:$14 sps:$4 sm:$0x33]  }
  0x32   :  { %894 = vmatprep.subr.bf16.mxu0 %v1395_v27  ;;  %849 = vmatprep.subr.bf16.mxu1 %v1463_v55  ;;  %v149_v27 = vrot.slane %v1519_v19, %v1659_v28  ;;  %v1513_v49 = vld [vmem:[#allocation2 + $0xf0] ss:$8 sps:$4 sm:$0xff]   ;;  %v1740_v55 = vrot.slane %v1536_v47, %v1659_v28  ;;  %v1484_v17 = vld [vmem:[#allocation2 + $0x280] ss:$8 sps:$4 sm:$0xff]   ;;  %v1492_v19 = vld [vmem:[#allocation2 + $0x294] ss:$8 sps:$4 sm:$0xff]  }
  0x33   :  { %v101_v31 = vcombine.high %v78_v24, %v92_v25  ;;  %v1541_v53 = vld [vmem:[%s1825_s0 + $0x60] ss:$14 sps:$4 sm:$0x33]   ;;  %v1546_v18 = vld [vmem:[%s1828_s3 + $0x50] sm:$0xff]   ;;  %v1556_v47 = vld [vmem:[%s1828_s3 + $0x78] sm:$0xff]  }
  0x34   :  { %v172_v35 = vcombine.high %v149_v27, %v163_v29  ;;  %v171_v51 = vcombine.low %v149_v27, %v163_v29  ;;  %v1542_v6 = vld [vmem:[%s1828_s3 + $0x40] sm:$0xff]   ;;  %v1547_v20 = vld [vmem:[%s1828_s3 + $0x10] sm:$0xff]  }
  0x35   :  { %895 = vmatpush1.bf16.msra.mxu0 %v1397_v33  ;;  %850 = vmatpush1.bf16.msra.mxu1 %v1465_v57  ;;  %v1501_v33 = vld [vmem:[#allocation2 + $0xd0] ss:$8 sps:$4 sm:$0xff]   ;;  %v1510_v27 = vld [vmem:[#allocation2 + $0x2c4] ss:$8 sps:$4 sm:$0xff]   ;;  %v1508_v29 = vld [vmem:[#allocation2 + $0x2c0] ss:$8 sps:$4 sm:$0xff]  }
  0x36   :  { %896 = vmatprep.subr.bf16.mxu0 %v1398_v40  ;;  %851 = vmatprep.subr.bf16.mxu1 %v1469_v59  ;;  %v225_v36 = vpack.c.bf16 %v172_v35, %v101_v31  ;;  %v1462_v40 = vld [vmem:[#allocation2 + $0x244] ss:$8 sps:$4 sm:$0xff]   ;;  %v1468_v59 = vld [vmem:[#allocation2 + $0x254] ss:$8 sps:$4 sm:$0xff]   ;;  %v1514_v31 = vld [vmem:[#allocation2 + $0x2d0] ss:$8 sps:$4 sm:$0xff]  }
  0x38   :  { %867 = vmatprep.mubr.bf16.mxu1 %v225_v36 }
  0x39   :  { %897 = vmatpush1.bf16.msra.mxu0 %v1400_v45  ;;  %852 = vmatpush1.bf16.msra.mxu1 %v1471_v61  ;;  %v1722_v45 = vrot.slane %v1530_v38, %v1659_v28 }
  0x3a   :  { %898 = vmatprep.subr.bf16.mxu0 %v1401_v46  ;;  %853 = vmatprep.subr.bf16.mxu1 %v1475_v63  ;;  %v1725_v46 = vrot.slane %v1533_v39, %v1659_v28  ;;  %v121_v63 = vrot.slane %v1532_v43, %v1659_v28  ;;  %v1548_v39 = vld [vmem:[%s1828_s3 + $0x58] sm:$0xff]   ;;  %v1552_v43 = vld [vmem:[%s1828_s3 + $0x68] sm:$0xff]  }
  0x3c   :  { %v136_v35 = vcombine.low %v1722_v45, %v1725_v46 }
  0x3d   :  { %899 = vmatpush1.bf16.msra.mxu0 %v1403_v50  ;;  %854 = vmatpush1.bf16.msra.mxu1 %v1477_v1  ;;  %v100_v50 = vcombine.low %v78_v24, %v92_v25  ;;  %v192_v1 = vrot.slane %v1538_v48, %v1659_v28  ;;  %v1496_v24 = vld [vmem:[#allocation2 + $0x2a0] ss:$8 sps:$4 sm:$0xff]   ;;  %v1504_v25 = vld [vmem:[#allocation2 + $0x2b4] ss:$8 sps:$4 sm:$0xff]  }
  0x3e   :  { %900 = vmatprep.subr.bf16.mxu0 %v1404_v52  ;;  %855 = vmatprep.subr.bf16.mxu1 %v1481_v3  ;;  %v1539_v52 = vld [vmem:[%s1825_s0 + $0x5c] ss:$14 sps:$4 sm:$0xff]  }
  0x3f   :  { %v1745_v57 = vrot.slane %v1539_v52, %v1659_v28  ;;  %v1474_v3 = vld [vmem:[#allocation2 + $0x264] ss:$8 sps:$4 sm:$0xff]  }
  0x40   :  { %v1557_v48 = vld [vmem:[%s1828_s3 + $0x38] sm:$0xff]  }
  0x41   :  { %901 = vmatpush1.bf16.msra.mxu0 %v1406_v54  ;;  %856 = vmatpush1.bf16.msra.mxu1 %v1483_v7  ;;  %v1460_v54 = vld [vmem:[#allocation2 + $0x240] ss:$8 sps:$4 sm:$0xff]   ;;  %v208_v61 = vcombine.high %v1740_v55, %v1745_v57  ;;  %v207_v36 = vcombine.low %v1740_v55, %v1745_v57  ;;  %v333_v57 = vsub.s32 0, %v1656_v21 }
  0x42   :  { %902 = vmatprep.subr.bf16.mxu0 %v1407_v56  ;;  %857 = vmatprep.subr.bf16.mxu1 %v1487_v9  ;;  %v137_v56 = vcombine.high %v1722_v45, %v1725_v46  ;;  %v1472_v7 = vld [vmem:[#allocation2 + $0x260] ss:$8 sps:$4 sm:$0xff]  }
  0x43   :  { %v228_v38 = vpack.c.bf16 %v207_v36, %v136_v35  ;;  %v1554_v45 = vld [vmem:[%s1828_s3 + $0x70] sm:$0xff]  }
  0x44   :  { %v229_v5 = vpack.c.bf16 %v208_v61, %v137_v56  ;;  %v1555_v46 = vld [vmem:[%s1828_s3 + $0x30] sm:$0xff]  }
  0x45   :  { %903 = vmatpush1.bf16.msra.mxu0 %v1409_v58  ;;  %858 = vmatpush1.bf16.msra.mxu1 %v1489_v12  ;;  %v1526_v58 = vld [vmem:[#allocation2 + $0x304] ss:$8 sps:$4 sm:$0xff]   ;;  %v1543_v12 = vld [vmem:[%s1828_s3] sm:$0xff]  }
  0x46   :  { %904 = vmatprep.subr.bf16.mxu0 %v1410_v60  ;;  %859 = vmatprep.subr.bf16.mxu1 %v1493_v14  ;;  %v224_v60 = vpack.c.bf16 %v171_v51, %v100_v50  ;;  %v1544_v14 = vld [vmem:[%s1828_s3 + $0x48] sm:$0xff]  }
  0x49   :  { %905 = vmatpush1.bf16.msra.mxu0 %v1412_v62  ;;  %860 = vmatpush1.bf16.msra.mxu1 %v1495_v16  ;;  %v1466_v62 = vld [vmem:[#allocation2 + $0x250] ss:$8 sps:$4 sm:$0xff]  }
  0x4a   :  { %906 = vmatprep.subr.bf16.mxu0 %v1416_v0  ;;  %861 = vmatprep.subr.bf16.mxu1 %v1499_v23  ;;  %v135_v0 = vrot.slane %v1535_v44, %v1659_v28  ;;  %v1545_v16 = vld [vmem:[%s1828_s3 + $0x8] sm:$0xff]   ;;  %v1498_v23 = vld [vmem:[#allocation2 + $0x2a4] ss:$8 sps:$4 sm:$0xff]  }
  0x4b   :  { %v1553_v44 = vld [vmem:[%s1828_s3 + $0x28] sm:$0xff]  }
  0x4d   :  { %907 = vmatpush1.bf16.msra.mxu0 %v1418_v2  ;;  %862 = vmatpush1.bf16.msra.mxu1 %v1501_v33  ;;  %v206_v2 = vrot.slane %v1541_v53, %v1659_v28  ;;  %v1521_v33 = vld [vmem:[#allocation2 + $0x2e0] ss:$8 sps:$4 sm:$0xff]  }
  0x4e   :  { %908 = vmatprep.subr.bf16.mxu0 %v1422_v4  ;;  %863 = vmatprep.subr.bf16.mxu1 %v1505_v34  ;;  %v1524_v4 = vld [vmem:[#allocation2 + $0x300] ss:$8 sps:$4 sm:$0xff]   ;;  %v1529_v34 = vld [vmem:[#allocation2 + $0x2f4] ss:$8 sps:$4 sm:$0xff]  }
  0x4f   :  { %v209_v9 = vcombine.low %v192_v1, %v206_v2 }
  0x51   :  { %909 = vmatpush1.bf16.msra.mxu0 %v1424_v8  ;;  %864 = vmatpush1.bf16.msra.mxu1 %v1507_v41  ;;  %v138_v8 = vcombine.low %v121_v63, %v135_v0  ;;  %v1550_v41 = vld [vmem:[%s1828_s3 + $0x60] sm:$0xff]  }
  0x52   :  { %921 = vmatprep.subr.bf16.mxu0 %v1438_v10  ;;  %865 = vmatprep.subr.bf16.mxu1 %v1511_v42  ;;  %v1480_v10 = vld [vmem:[#allocation2 + $0x274] ss:$8 sps:$4 sm:$0xff]  }
  0x53   :  { %v230_v28 = vpack.c.bf16 %v209_v9, %v138_v8  ;;  %v1551_v42 = vld [vmem:[%s1828_s3 + $0x20] sm:$0xff]  }
  0x54   :  { %911 = vmatmul.mubr.bf16.vlgmr.msra.gmra.mrb[0].mxu0 %v226_v11  ;;  %v1610_v11 = vmov 0  }
  0x55   :  { %922 = vmatpush1.bf16.msra.mxu0 %v1436_v13  ;;  %866 = vmatpush1.bf16.msra.mxu1 %v1513_v49  ;;  %v1478_v13 = vld [vmem:[#allocation2 + $0x270] ss:$8 sps:$4 sm:$0xff]  }
  0x56   :  { %923 = vmatprep.subr.bf16.mxu0 %v1444_v15  ;;  %964 = vmatprep.subr.bf16.mxu1 %v1526_v58  ;;  %v1486_v15 = vld [vmem:[#allocation2 + $0x284] ss:$8 sps:$4 sm:$0xff]   ;;  %v329_v58 = vld [vmem:[%s1827_s2] sm:$0x3] }
  0x57   :  { %953 = vmatprep.mubr.bf16.mxu0 %v229_v5 }
  0x58   :  { %868 = vmatmul.mubr.bf16.vlgmr.msra.gmra.mrb[0].mxu1 %v224_v60  ;;  %v334_v60 = vrot.slane %v329_v58, %v333_v57 }
  0x59   :  { %924 = vmatpush1.bf16.msra.mxu0 %v1442_v22  ;;  %965 = vmatpush1.bf16.msra.mxu1 %v1524_v4  ;;  %v1490_v22 = vld [vmem:[#allocation2 + $0x290] ss:$8 sps:$4 sm:$0xff]  }
  0x5a   :  { %925 = vmatprep.subr.bf16.mxu0 %v1450_v26  ;;  %996 = vmatprep.mubr.bf16.mxu1 %v1610_v11  ;;  %v1502_v26 = vld [vmem:[#allocation2 + $0x2b0] ss:$8 sps:$4 sm:$0xff]  }
  0x5b   :  { %1325 = vmatprep.subr.bf16.mxu1 %v1542_v6 }
  0x5d   :  { %926 = vmatpush1.bf16.msra.mxu0 %v1448_v30  ;;  %v1516_v30 = vld [vmem:[#allocation2 + $0x2d4] ss:$8 sps:$4 sm:$0xff]  }
  0x5e   :  { %927 = vmatprep.subr.bf16.mxu0 %v1456_v32  ;;  %v1523_v32 = vld [vmem:[#allocation2 + $0x2e4] ss:$8 sps:$4 sm:$0xff]  }
  0x60   :  { %1307 = vmatmul.mubr.msk.bf16.vlgmr.msra.gmra.mrb[4].mxu1 %vm831_vm0, %v230_v28 }
  0x61   :  { %928 = vmatpush1.bf16.msra.mxu0 %v1454_v37  ;;  %1326 = vmatpush3.bf16.msra.mxu1 %v1543_v12  ;;  %v1527_v37 = vld [vmem:[#allocation2 + $0x2f0] ss:$8 sps:$4 sm:$0xff]  }
  0x62   :  { %929 = vmatprep.subr.bf16.mxu0 %v1462_v40  ;;  %1327 = vmatprep.subr.bf16.mxu1 %v1544_v14  ;;  %v1549_v40 = vld [vmem:[%s1828_s3 + $0x18] sm:$0xff]  }
  0x65   :  { %930 = vmatpush1.bf16.msra.mxu0 %v1460_v54  ;;  %1328 = vmatpush3.bf16.msra.mxu1 %v1545_v16 }
  0x66   :  { %931 = vmatprep.subr.bf16.mxu0 %v1468_v59  ;;  %1329 = vmatprep.subr.bf16.mxu1 %v1546_v18  ;;  %v337_v59 = vsub.s32 1, %v1656_v21 }
  0x68   :  { %v338_v61 = vrot.slane %v329_v58, %v337_v59 }
  0x69   :  { %932 = vmatpush1.bf16.msra.mxu0 %v1466_v62  ;;  %1330 = vmatpush3.bf16.msra.mxu1 %v1547_v20 }
  0x6a   :  { %933 = vmatprep.subr.bf16.mxu0 %v1474_v3  ;;  %1331 = vmatprep.subr.bf16.mxu1 %v1548_v39 }
  0x6d   :  { %934 = vmatpush1.bf16.msra.mxu0 %v1472_v7  ;;  %1332 = vmatpush3.bf16.msra.mxu1 %v1549_v40 }
  0x6e   :  { %935 = vmatprep.subr.bf16.mxu0 %v1480_v10  ;;  %1333 = vmatprep.subr.bf16.mxu1 %v1550_v41 }
  0x71   :  { %936 = vmatpush1.bf16.msra.mxu0 %v1478_v13  ;;  %1334 = vmatpush3.bf16.msra.mxu1 %v1551_v42 }
  0x72   :  { %937 = vmatprep.subr.bf16.mxu0 %v1486_v15  ;;  %1335 = vmatprep.subr.bf16.mxu1 %v1552_v43 }
  0x75   :  { %938 = vmatpush1.bf16.msra.mxu0 %v1484_v17  ;;  %1336 = vmatpush3.bf16.msra.mxu1 %v1553_v44 }
  0x76   :  { %939 = vmatprep.subr.bf16.mxu0 %v1492_v19  ;;  %1337 = vmatprep.subr.bf16.mxu1 %v1554_v45  ;;  %v1308_v19 = vld [vmem:[%s1829_s4] ss:$0 sm:$0xff] }
  0x79   :  { %940 = vmatpush1.bf16.msra.mxu0 %v1490_v22  ;;  %1338 = vmatpush3.bf16.msra.mxu1 %v1555_v46 }
  0x7a   :  { %941 = vmatprep.subr.bf16.mxu0 %v1498_v23  ;;  %1339 = vmatprep.subr.bf16.mxu1 %v1556_v47 }
  0x7d   :  { %942 = vmatpush1.bf16.msra.mxu0 %v1496_v24  ;;  %1340 = vmatpush3.bf16.msra.mxu1 %v1557_v48 }
  0x7e   :  { %943 = vmatprep.subr.bf16.mxu0 %v1504_v25 }
  0x81   :  { %944 = vmatpush1.bf16.msra.mxu0 %v1502_v26 }
  0x82   :  { %945 = vmatprep.subr.bf16.mxu0 %v1510_v27 }
  0x85   :  { %946 = vmatpush1.bf16.msra.mxu0 %v1508_v29 }
  0x86   :  { %947 = vmatprep.subr.bf16.mxu0 %v1516_v30 }
  0x89   :  { %948 = vmatpush1.bf16.msra.mxu0 %v1514_v31 }
  0x8a   :  { %949 = vmatprep.subr.bf16.mxu0 %v1523_v32 }
  0x8d   :  { %950 = vmatpush1.bf16.msra.mxu0 %v1521_v33 }
  0x8e   :  { %951 = vmatprep.subr.bf16.mxu0 %v1529_v34 }
  0x91   :  { %952 = vmatpush1.bf16.msra.mxu0 %v1527_v37 }
  0x94   :  { %954 = vmatmul.mubr.bf16.vlgmr.msra.gmra.mrb[0].mxu0 %v228_v38 }
 0x12b   :  { %v869_v49 = vpop.f32.mrb[0].mxu1 }
 0x12c   :  { %v871_v50 = vpop.f32.mrb[1].mxu1  ;;  %v870_v62 = vadd.f32 %v869_v49, %v334_v60 }
 0x12d   :  { %v873_v51 = vpop.f32.mrb[2].mxu1  ;;  %v872_v63 = vadd.f32 %v871_v50, %v338_v61 }
 0x12e   :  { %v875_v52 = vpop.f32.mrb[3].mxu1  ;;  %v874_v1 = vadd.f32 %v873_v51, %v334_v60 }
 0x12f   :  { %v876_v4 = vadd.f32 %v875_v52, %v338_v61 }
 0x133   :  { %v998_v53 = vpop.f32.mrb[4].mxu1 }
 0x134   :  { %v1000_v54 = vpop.f32.mrb[5].mxu1 }
 0x135   :  { %v1002_v55 = vpop.f32.mrb[6].mxu1 }
 0x136   :  { %v1004_v56 = vpop.f32.mrb[7].mxu1 }
 0x167   :  { %v955_v0 = vpop.f32.mrb[0].mxu0 }
 0x168   :  { %v1348_v2 = vadd.f32 %v955_v0, %v870_v62  ;;  %v957_v3 = vpop.f32.mrb[1].mxu0 }
 0x169   :  { %v1351_v5 = vadd.f32 %v957_v3, %v872_v63  ;;  %v959_v6 = vpop.f32.mrb[2].mxu0 }
 0x16a   :  { %v1349_v7 = vadd.f32 %v1348_v2, %v998_v53  ;;  %v1354_v8 = vadd.f32 %v959_v6, %v874_v1  ;;  %v961_v9 = vpop.f32.mrb[3].mxu0 }
 0x16b   :  { %v1352_v10 = vadd.f32 %v1351_v5, %v1000_v54  ;;  %v1357_v11 = vadd.f32 %v961_v9, %v876_v4 }
 0x16c   :  { %v1355_v28 = vadd.f32 %v1354_v8, %v1002_v55  ;;  %v1007_v13 = vmax.f32 %v1349_v7, 0.0 }
 0x16d   :  { %v1358_v12 = vadd.f32 %v1357_v11, %v1004_v56  ;;  %v1008_v14 = vmax.f32 %v1352_v10, 0.0 }
 0x16e   :  { %v1009_v21 = vmax.f32 %v1355_v28, 0.0 }
 0x16f   :  { %v1010_v15 = vmax.f32 %v1358_v12, 0.0 }
 0x170   :  { %v1011_v16 = vpack.c.bf16 %v1009_v21, %v1007_v13 }
 0x171   :  { %v1012_v17 = vpack.c.bf16 %v1010_v15, %v1008_v14 }
 0x173   :  { %1180 = vmatprep.mubr.bf16.mxu1 %v1012_v17 }
 0x174   :  { %1181 = vmatmul.mubr.bf16.vlgmr.msra.gmra.mrb[8].mxu1 %v1011_v16 }
 0x247   :  { %v1341_v18 = vpop.f32.mrb[8].mxu1 }
 0x248   :  { %v1342_v20 = vpop.f32.mrb[9].mxu1 }
 0x249   :  { %v1343_v22 = vadd.f32 %v1342_v20, %v1341_v18  ;;  %v1344_v23 = vpop.f32.mrb[10].mxu1 }
 0x24a   :  { %v1345_v24 = vpop.f32.mrb[11].mxu1 }
 0x24b   :  { %v1183_v25 = vadd.f32 %v1343_v22, %v1308_v19  ;;  %v1346_v26 = vadd.f32 %v1345_v24, %v1344_v23 }
 0x24d   :  { %1190 = vst.msk [vmem:[#allocation5] sm:$0xff] %vm1189_vm1, %v1183_v25  ;;  %v1186_v27 = vadd.f32 %v1346_v26, %v1308_v19 }
 0x24f   :  { %1191 = vst.msk [vmem:[#allocation5 + $0x8] sm:$0xff] %vm1189_vm1, %v1186_v27 }
 0x250   :  { %1196 = vsyncadd [#allocation4], 224  ;;  %s1611_s18 = smov [#allocation5]  }
 0x251   :  { %s1197_s19 = sshll.u32 %s1611_s18, 4  ;;  %s1198_s19 = int_to_ptr.vmem [resolvable:$true] %s1197_s19 }
 0x252   :  { %s1580_s20 = scalar_lea.vmem %s1198_s19, 32  ;;  %s1584_s21 = scalar_lea.vmem %s1198_s19, 256 }
 0x253   :  { %p1581_p8 = scmp.ne.s32.totalorder %s1198_s19, %s1580_s20  ;;  %p1585_p9 = scmp.lt.s32.totalorder %s1198_s19, %s1198_s19 }
 0x254   :  { %p1586_p10 = scmp.lt.s32.totalorder %s1584_s21, %s1580_s20 }
 0x256   :  { %p1587_p11 = por %p1586_p10, %p1585_p9 }
 0x258   :  { %p1588_p12 = pnand %p1587_p11, %p1581_p8 }
 0x25a   :  { %1591 = shalt.err (!%p1588_p12)
}
 0x25b   :  { %s1592_s23 = scalar_lea.hbm %s1830_s5, 32 }
 0x25c   :  { %p1593_p13 = scmp.ne.s32.totalorder %s1830_s5, %s1592_s23  ;;  %p1596_p0 = scmp.lt.u32.totalorder %s1592_s23, %s1830_s5 }
 0x25e   :  { %p1598_p1 = pnand %p1596_p0, %p1593_p13 }
 0x260   :  { %1601 = shalt.err (!%p1598_p1)
}
 0x261   :  { %s1612_s28 = smov 32   ;;  %s1613_s29 = smov 2  }
 0x262   :  { %1203 = dma.vmem_to_hbm [thread:$0]  %s1198_s19, 32, %s1830_s5, [#allocation4], %s1612_s28, %s1612_s28, %s1613_s29  }
 0x263   :  { %1604 = dma.done.wait [#allocation4], 256  }
 0x264   :  { %1605 = vsyncadd [#allocation4], 4294967040 }
 0x265   :  { %1207 = vsyncpa [#allocation3], 1 }
 0x266   :  { %1208 = vsyncpa [#allocation4], 1 }

</bundles_post_ra>
